<compile_context>
chip_gen: v5e
topology: v5e:2x2
jax: 0.10.0
libtpu: 0.0.40
codegen_flags: <defaults>
</compile_context>

<pallas_src>
import math
import functools

import jax
import jax.numpy as jnp
from jax.experimental import pallas as pl
from jax.experimental.pallas import tpu as pltpu

LANES = 128
SUBLANES = 8


def _cdiv(a, b):
    return (a + b - 1) // b


def _round_up(a, b):
    return _cdiv(a, b) * b


def _row_align(itemsize):
    # Rows per packed (sublane) tile: f32 -> 8, bf16/f16 -> 16, int8/fp8 -> 32.
    return SUBLANES * max(1, 4 // int(itemsize))


# --------------------------------------------------------------------------- config
@functools.lru_cache(maxsize=1)
def _tpu_config():
    """Generation-aware (ncores, max_block_rows, vmem_budget, vmem_limit)."""
    vmem_bytes = None
    try:
        vmem_bytes = int(pltpu.get_tpu_info().vmem_capacity_bytes)
    except Exception:
        vmem_bytes = None
    kind = ""
    try:
        kind = jax.devices()[0].device_kind.lower()
    except Exception:
        pass
    is_v7 = "v7" in kind
    if vmem_bytes is None:
        vmem_bytes = (64 if is_v7 else 128) * (1 << 20)

    vmem_limit = min(max(vmem_bytes - 16 * (1 << 20), 16 * (1 << 20)), 64 * (1 << 20))
    max_rows = 8192 if vmem_bytes > 64 * (1 << 20) else 4096
    if is_v7:
        # v7x: 64 MiB VMEM per TensorCore -> cap blocks and the scoped limit.
        vmem_limit = min(vmem_limit, 48 * (1 << 20))
        max_rows = min(max_rows, 4096)

    # Only v7x has 2 TensorCores per device that need explicit core sharding.
    ncores = 2 if is_v7 else 1
    budget = vmem_limit - 8 * (1 << 20)
    return ncores, max_rows, budget, vmem_limit


# --------------------------------------------------------------------------- kernel
def _rd_fused_kernel(lik_meta, x_meta, bpc, ncores, *refs):
    """Fused rate-distortion reductions.

    lik_meta[k] = (rows, block_rows, num_blocks)   -- static Python ints
    x_meta      = (rows, block_rows, num_blocks) or None
    refs        = (*lik_refs, [xhat_ref, target_ref,] log_out_ref, sq_out_ref)

    The two outputs are per-core (8, 128) f32 partial sums; their BlockSpec
    index is constant along the inner ('arbitrary') axis, so they stay
    resident in VMEM and double as accumulators across grid steps.
    """
    n_lik = len(lik_meta)
    lik_refs = refs[:n_lik]
    pos = n_lik
    if x_meta is not None:
        xhat_ref, target_ref = refs[pos], refs[pos + 1]
        pos += 2
    log_out_ref, sq_out_ref = refs[pos], refs[pos + 1]

    if ncores > 1:
        c, i = pl.program_id(0), pl.program_id(1)
        step = c * bpc + i
    else:
        i = pl.program_id(0)
        step = i

    @pl.when(i == 0)
    def _init():
        log_out_ref[...] = jnp.zeros_like(log_out_ref)
        sq_out_ref[...] = jnp.zeros_like(sq_out_ref)

    def _fold(vals):
        # (blk, 128) -> (8, 128): groups whole (8, 128) tiles; pure vreg adds.
        return vals.reshape(-1, SUBLANES, LANES).sum(axis=0)

    def _mask_last(vals, rows, blk, nblk):
        # Only the last block can be partial; the valid-row count is static.
        valid_rows = rows - (nblk - 1) * blk
        rid = jax.lax.broadcasted_iota(jnp.int32, vals.shape, 0)
        # Keep this a true select: Pallas edge padding is unspecified and may
        # contain NaN/Inf (e.g. from jnp.log of garbage); select discards it.
        return jnp.where(rid < valid_rows, vals, 0.0)

    # --- sum((x_hat - target)^2): dominant, HBM-bandwidth-bound ---------------
    if x_meta is not None:
        x_rows, x_blk, x_nblk = x_meta
        x_ragged = (x_rows % x_blk) != 0
        x_full = x_nblk - 1 if x_ragged else x_nblk

        def _sq_vals():
            d = xhat_ref[...].astype(jnp.float32) - target_ref[...].astype(jnp.float32)
            return d * d

        if x_full > 0:
            @pl.when(step < x_full)            # full blocks: no iota / cmp / select
            def _sq_full():
                sq_out_ref[...] += _fold(_sq_vals())

        if x_ragged:
            @pl.when(step == x_nblk - 1)       # single ragged block: masked select
            def _sq_last():
                sq_out_ref[...] += _fold(_mask_last(_sq_vals(), x_rows, x_blk, x_nblk))

    # --- sum(log(likelihoods)) over every latent -------------------------------
    for l_ref, (l_rows, l_blk, l_nblk) in zip(lik_refs, lik_meta):
        l_ragged = (l_rows % l_blk) != 0
        l_full = l_nblk - 1 if l_ragged else l_nblk

        def _lg_vals(l_ref=l_ref):
            return jnp.log(l_ref[...].astype(jnp.float32))

        if l_full > 0:
            @pl.when(step < l_full)
            def _lg_full(_lg_vals=_lg_vals):
                log_out_ref[...] += _fold(_lg_vals())

        if l_ragged:
            @pl.when(step == l_nblk - 1)
            def _lg_last(_lg_vals=_lg_vals, l_rows=l_rows, l_blk=l_blk, l_nblk=l_nblk):
                log_out_ref[...] += _fold(_mask_last(_lg_vals(), l_rows, l_blk, l_nblk))


# --------------------------------------------------------------------------- wrappers
def _split_slab(x):
    """Flatten into a zero-copy (rows, 128) main slab plus a < 128-element tail.

    No full-size pad/concat copy is ever made; dtype is preserved in HBM and
    cast to f32 inside the kernel. The tiny tail (if any) is reduced in XLA.
    """
    flat = x.reshape(-1)
    n = flat.shape[0]
    main_rows = n // LANES
    main_n = main_rows * LANES
    main = flat[:main_n].reshape(main_rows, LANES) if main_rows > 0 else None
    tail = flat[main_n:] if main_n != n else None
    return main, tail


def _plan_blocks(specs, max_rows, budget_bytes):
    """Pick block rows per input, charging each input its REAL footprint.

    specs: list of (rows, itemsizes) where itemsizes is a tuple containing one
    entry per array that shares this block shape (x_hat & target share one).
    """
    def blk_for(rows, itemsizes, cap_rows):
        align = max(_row_align(isz) for isz in itemsizes)
        cap = max(align, (cap_rows // align) * align)
        return min(cap, _round_up(rows, align))

    def footprint(cap_rows):
        total = 0
        for rows, itemsizes in specs:
            blk = blk_for(rows, itemsizes, cap_rows)
            total += sum(2 * blk * LANES * int(isz) for isz in itemsizes)  # 2 = dbl buf
        return total

    cap = max_rows
    while cap > 4 * SUBLANES and footprint(cap) > budget_bytes:
        cap //= 2
    return [blk_for(rows, itemsizes, cap) for rows, itemsizes in specs]


def rate_distortion_sums(likelihoods, x_hat, target):
    """One fused pallas_call -> (sum(log(all likelihoods)), sum((x_hat-target)^2))."""
    ncores, max_rows, budget, vmem_limit = _tpu_config()

    # Zero-copy main slabs + plain-XLA tails (reduction-exact, tiny).
    lik_main = []
    log_tail = jnp.float32(0.0)
    for lik in likelihoods:
        main, tail = _split_slab(lik)
        if main is not None:
            lik_main.append(main)
        if tail is not None:
            log_tail = log_tail + jnp.sum(jnp.log(tail.astype(jnp.float32)))

    x_main, x_tail = _split_slab(x_hat)
    t_main, t_tail = _split_slab(target)
    sq_tail = jnp.float32(0.0)
    if x_tail is not None:
        dt = x_tail.astype(jnp.float32) - t_tail.astype(jnp.float32)
        sq_tail = jnp.sum(dt * dt)

    have_x = x_main is not None
    if not lik_main and not have_x:
        return log_tail, sq_tail

    # Block planning: tiny likelihood slabs no longer shrink the x/target blocks.
    specs = [(s.shape[0], (s.dtype.itemsize,)) for s in lik_main]
    if have_x:
        specs.append((x_main.shape[0], (x_main.dtype.itemsize, t_main.dtype.itemsize)))
    blks = _plan_blocks(specs, max_rows, budget)

    lik_meta = tuple(
        (lik_main[k].shape[0], blks[k], _cdiv(lik_main[k].shape[0], blks[k]))
        for k in range(len(lik_main)))
    x_meta = None
    if have_x:
        xb = blks[-1]
        x_meta = (x_main.shape[0], xb, _cdiv(x_main.shape[0], xb))

    nblks = [m[2] for m in lik_meta] + ([x_meta[2]] if have_x else [])
    total_steps = max(nblks)
    bpc = _cdiv(total_steps, ncores)

    def block_map(nblk):
        last = nblk - 1
        if ncores > 1:
            # Clamp: an exhausted core keeps pointing at its last valid block
            # (no re-DMA since the index is unchanged; pl.when gates the add).
            return lambda c, i: (jnp.minimum(c * bpc + i, last), 0)
        return lambda i: (jnp.minimum(i, last), 0)

    in_specs = [pl.BlockSpec((m[1], LANES), block_map(m[2])) for m in lik_meta]
    inputs = list(lik_main)
    if have_x:
        in_specs += [pl.BlockSpec((x_meta[1], LANES), block_map(x_meta[2])),
                     pl.BlockSpec((x_meta[1], LANES), block_map(x_meta[2]))]
        inputs += [x_main, t_main]

    if ncores > 1:
        grid = (ncores, bpc)
        out_spec = pl.BlockSpec((None, SUBLANES, LANES), lambda c, i: (c, 0, 0))
        out_shape = jax.ShapeDtypeStruct((ncores, SUBLANES, LANES), jnp.float32)
        semantics = (pltpu.CORE_PARALLEL, pltpu.ARBITRARY)   # real per-TC sharding
    else:
        grid = (bpc,)
        out_spec = pl.BlockSpec((SUBLANES, LANES), lambda i: (0, 0))
        out_shape = jax.ShapeDtypeStruct((SUBLANES, LANES), jnp.float32)
        semantics = (pltpu.ARBITRARY,)

    kernel = functools.partial(_rd_fused_kernel, lik_meta, x_meta, bpc, ncores)

    log_part, sq_part = pl.pallas_call(
        kernel,
        out_shape=(out_shape, out_shape),
        grid_spec=pltpu.PrefetchScalarGridSpec(
            num_scalar_prefetch=0,
            grid=grid,
            in_specs=in_specs,
            out_specs=(out_spec, out_spec),
        ),
        compiler_params=pltpu.CompilerParams(
            dimension_semantics=semantics,
            vmem_limit_bytes=vmem_limit,
        ),
    )(*inputs)

    # Tiny final cross-lane reduce of the (8, 128) partials in plain XLA.
    return jnp.sum(log_part) + log_tail, jnp.sum(sq_part) + sq_tail


# --------------------------------------------------------------------------- module
class RateDistortionLoss:
    """JAX/Pallas port of the PyTorch RateDistortionLoss module."""

    def __init__(self, lmbda=0.01):
        self.lmbda = lmbda

    def __call__(self, output, target):
        # target: (N, C, H, W), NCHW like PyTorch.
        N, _, H, W = target.shape
        num_pixels = N * H * W

        log_sum, sq_sum = rate_distortion_sums(
            list(output["likelihoods"].values()), output["x_hat"], target)

        # bpp: same denominator for every latent, so one combined log-sum is exact.
        bpp_loss = log_sum / (-math.log(2) * num_pixels)
        # nn.MSELoss() default reduction='mean' over ALL elements.
        mse_loss = sq_sum / jnp.float32(target.size)
        loss = self.lmbda * (255.0 ** 2) * mse_loss + bpp_loss
        return {"bpp_loss": bpp_loss, "mse_loss": mse_loss, "loss": loss}


# --------------------------------------------------------------------------- main
if __name__ == "__main__":
    criterion = RateDistortionLoss(lmbda=0.01)

    def run_case(key, N, C, H, W, lik_shapes):
        keys = jax.random.split(key, 2 + len(lik_shapes))
        target = jax.random.uniform(keys[0], (N, C, H, W), dtype=jnp.float32)
        x_hat = target + 0.05 * jax.random.normal(keys[1], (N, C, H, W),
                                                  dtype=jnp.float32)
        liks = {}
        for idx, (name, shp) in enumerate(lik_shapes):
            liks[name] = jax.random.uniform(keys[2 + idx], shp, dtype=jnp.float32,
                                            minval=0.05, maxval=1.0)
        output = {"x_hat": x_hat, "likelihoods": liks}
        out = criterion(output, target)
        out = jax.tree_util.tree_map(jax.block_until_ready, out)

        # Pure-JAX reference.
        num_pixels = N * H * W
        ref_bpp = sum(jnp.sum(jnp.log(l)) for l in liks.values()) / (
            -math.log(2) * num_pixels)
        ref_mse = jnp.mean((x_hat - target) ** 2)
        ref_loss = 0.01 * 255.0 ** 2 * ref_mse + ref_bpp

        assert jnp.allclose(out["bpp_loss"], ref_bpp, rtol=1e-5, atol=1e-5)
        assert jnp.allclose(out["mse_loss"], ref_mse, rtol=1e-5, atol=1e-6)
        assert jnp.allclose(out["loss"], ref_loss, rtol=1e-5, atol=1e-5)

    root = jax.random.PRNGKey(0)
    k1, k2 = jax.random.split(root)

    # Case 1: 128-aligned sizes (pure zero-copy slab path).
    run_case(k1, 2, 3, 16, 16, [("y", (2, 8, 4, 4)), ("z", (2, 8, 2, 2))])
    # Case 2: ragged sizes (exercises the masked last block + XLA tail path).
    run_case(k2, 2, 3, 17, 17, [("y", (2, 8, 5, 5)), ("z", (2, 8, 2, 2))])

    print("KERNEL_OK")
</pallas_src>

<mosaic_0001>
module attributes {stable_mosaic.version = 11 : i64} {
  func.func @_rd_fused_kernel(%arg0: i32, %arg1: memref<8x128xf32, #tpu.memory_space<vmem>>, %arg2: memref<16x128xf32, #tpu.memory_space<vmem>>, %arg3: memref<16x128xf32, #tpu.memory_space<vmem>>, %arg4: memref<8x128xf32, #tpu.memory_space<vmem>>, %arg5: memref<8x128xf32, #tpu.memory_space<vmem>>) attributes {dimension_semantics = [#tpu.dimension_semantics<arbitrary>], iteration_bounds = array<i64: 1>, scalar_prefetch = 0 : i64, scratch_operands = 0 : i64, tpu.core_type = #tpu.core_type<tc>, window_params = [{transform_indices = @transform_0, window_bounds = array<i64: 8, 128>}, {transform_indices = @transform_1, window_bounds = array<i64: 16, 128>}, {transform_indices = @transform_2, window_bounds = array<i64: 16, 128>}, {pipeline_mode = #tpu.pipeline_mode<synchronous>, transform_indices = @transform_3, window_bounds = array<i64: 8, 128>}, {pipeline_mode = #tpu.pipeline_mode<synchronous>, transform_indices = @transform_4, window_bounds = array<i64: 8, 128>}]} {
    %c0_i32 = arith.constant 0 : i32
    %0 = arith.cmpi eq, %arg0, %c0_i32 : i32
    %1 = arith.extui %0 : i1 to i32
    %c0_i32_0 = arith.constant 0 : i32
    %2 = arith.cmpi ne, %1, %c0_i32_0 : i32
    scf.if %2 {
      %cst = arith.constant 0.000000e+00 : f32
      %9 = vector.broadcast %cst : f32 to vector<8x128xf32>
      %c0 = arith.constant 0 : index
      %c0_5 = arith.constant 0 : index
      %10 = vector.load %arg4[%c0, %c0_5] : memref<8x128xf32, #tpu.memory_space<vmem>>, vector<8x128xf32>
      tpu.vector_store %arg4[%c0, %c0_5], %9 {strides = array<i32>} : memref<8x128xf32, #tpu.memory_space<vmem>>, vector<8x128xf32>,
      %cst_6 = arith.constant 0.000000e+00 : f32
      %11 = vector.broadcast %cst_6 : f32 to vector<8x128xf32>
      %c0_7 = arith.constant 0 : index
      %c0_8 = arith.constant 0 : index
      %12 = vector.load %arg5[%c0_7, %c0_8] : memref<8x128xf32, #tpu.memory_space<vmem>>, vector<8x128xf32>
      tpu.vector_store %arg5[%c0_7, %c0_8], %11 {strides = array<i32>} : memref<8x128xf32, #tpu.memory_space<vmem>>, vector<8x128xf32>,
    } else {
    }
    %c0_i32_1 = arith.constant 0 : i32
    %3 = arith.cmpi eq, %arg0, %c0_i32_1 : i32
    %4 = arith.extui %3 : i1 to i32
    %c0_i32_2 = arith.constant 0 : i32
    %5 = arith.cmpi ne, %4, %c0_i32_2 : i32
    scf.if %5 {
      %c0 = arith.constant 0 : index
      %c0_5 = arith.constant 0 : index
      %9 = vector.load %arg5[%c0, %c0_5] : memref<8x128xf32, #tpu.memory_space<vmem>>, vector<8x128xf32>
      %c0_6 = arith.constant 0 : index
      %c0_7 = arith.constant 0 : index
      %10 = vector.load %arg2[%c0_6, %c0_7] : memref<16x128xf32, #tpu.memory_space<vmem>>, vector<16x128xf32>
      %c0_8 = arith.constant 0 : index
      %c0_9 = arith.constant 0 : index
      %11 = vector.load %arg3[%c0_8, %c0_9] : memref<16x128xf32, #tpu.memory_space<vmem>>, vector<16x128xf32>
      %12 = arith.subf %10, %11 : vector<16x128xf32>
      %13 = arith.mulf %12, %12 : vector<16x128xf32>
      %14 = tpu.iota {dimensions = array<i32: 0>} : vector<16x128xi32>
      %c12_i32 = arith.constant 12 : i32
      %15 = vector.broadcast %c12_i32 : i32 to vector<16x128xi32>
      %16 = arith.cmpi slt, %14, %15 : vector<16x128xi32>
      %cst = arith.constant 0.000000e+00 : f32
      %17 = vector.broadcast %cst : f32 to vector<16x128xf32>
      %18 = arith.select %16, %13, %17 : vector<16x128xi1>, vector<16x128xf32>
      %19 = vector.shape_cast %18 : vector<16x128xf32> to vector<2x8x128xf32>
      %cst_10 = arith.constant dense<0.000000e+00> : vector<8x128xf32>
      %20 = vector.multi_reduction <add>, %19, %cst_10 [0] : vector<2x8x128xf32> to vector<8x128xf32>
      %21 = arith.addf %9, %20 : vector<8x128xf32>
      %c0_11 = arith.constant 0 : index
      %c0_12 = arith.constant 0 : index
      %22 = vector.load %arg5[%c0_11, %c0_12] : memref<8x128xf32, #tpu.memory_space<vmem>>, vector<8x128xf32>
      tpu.vector_store %arg5[%c0_11, %c0_12], %21 {strides = array<i32>} : memref<8x128xf32, #tpu.memory_space<vmem>>, vector<8x128xf32>,
    } else {
    }
    %c0_i32_3 = arith.constant 0 : i32
    %6 = arith.cmpi eq, %arg0, %c0_i32_3 : i32
    %7 = arith.extui %6 : i1 to i32
    %c0_i32_4 = arith.constant 0 : i32
    %8 = arith.cmpi ne, %7, %c0_i32_4 : i32
    scf.if %8 {
      %c0 = arith.constant 0 : index
      %c0_5 = arith.constant 0 : index
      %9 = vector.load %arg4[%c0, %c0_5] : memref<8x128xf32, #tpu.memory_space<vmem>>, vector<8x128xf32>
      %c0_6 = arith.constant 0 : index
      %c0_7 = arith.constant 0 : index
      %10 = vector.load %arg1[%c0_6, %c0_7] : memref<8x128xf32, #tpu.memory_space<vmem>>, vector<8x128xf32>
      %11 = math.log %10 : vector<8x128xf32>
      %12 = tpu.iota {dimensions = array<i32: 0>} : vector<8x128xi32>
      %c2_i32 = arith.constant 2 : i32
      %13 = vector.broadcast %c2_i32 : i32 to vector<8x128xi32>
      %14 = arith.cmpi slt, %12, %13 : vector<8x128xi32>
      %cst = arith.constant 0.000000e+00 : f32
      %15 = vector.broadcast %cst : f32 to vector<8x128xf32>
      %16 = arith.select %14, %11, %15 : vector<8x128xi1>, vector<8x128xf32>
      %17 = vector.shape_cast %16 : vector<8x128xf32> to vector<1x8x128xf32>
      %cst_8 = arith.constant dense<0.000000e+00> : vector<8x128xf32>
      %18 = vector.multi_reduction <add>, %17, %cst_8 [0] : vector<1x8x128xf32> to vector<8x128xf32>
      %19 = arith.addf %9, %18 : vector<8x128xf32>
      %c0_9 = arith.constant 0 : index
      %c0_10 = arith.constant 0 : index
      %20 = vector.load %arg4[%c0_9, %c0_10] : memref<8x128xf32, #tpu.memory_space<vmem>>, vector<8x128xf32>
      tpu.vector_store %arg4[%c0_9, %c0_10], %19 {strides = array<i32>} : memref<8x128xf32, #tpu.memory_space<vmem>>, vector<8x128xf32>,
    } else {
    }
    return
  }
  func.func @transform_0(%arg0: i32) -> (i32, i32) {
    %c0_i32 = arith.constant 0 : i32
    %0 = arith.minsi %arg0, %c0_i32 : i32
    %c0_i32_0 = arith.constant 0 : i32
    %c0_i32_1 = arith.constant 0 : i32
    return %0, %c0_i32_0 : i32, i32
  }
  func.func @transform_1(%arg0: i32) -> (i32, i32) {
    %c0_i32 = arith.constant 0 : i32
    %0 = arith.minsi %arg0, %c0_i32 : i32
    %c0_i32_0 = arith.constant 0 : i32
    %c0_i32_1 = arith.constant 0 : i32
    return %0, %c0_i32_0 : i32, i32
  }
  func.func @transform_2(%arg0: i32) -> (i32, i32) {
    %c0_i32 = arith.constant 0 : i32
    %0 = arith.minsi %arg0, %c0_i32 : i32
    %c0_i32_0 = arith.constant 0 : i32
    %c0_i32_1 = arith.constant 0 : i32
    return %0, %c0_i32_0 : i32, i32
  }
  func.func @transform_3(%arg0: i32) -> (i32, i32) {
    %c0_i32 = arith.constant 0 : i32
    %c0_i32_0 = arith.constant 0 : i32
    %c0_i32_1 = arith.constant 0 : i32
    return %c0_i32, %c0_i32_0 : i32, i32
  }
  func.func @transform_4(%arg0: i32) -> (i32, i32) {
    %c0_i32 = arith.constant 0 : i32
    %c0_i32_0 = arith.constant 0 : i32
    %c0_i32_1 = arith.constant 0 : i32
    return %c0_i32, %c0_i32_0 : i32, i32
  }
}

</mosaic_0001>

<bundles_post_ra>
// kernel: tpu_custom_call.1
= control target key start
LH: loop header
LB: loop body
LE: loop exit
PB: predicated region body
PF: predicated region fallthrough
CT: control target
= control target key end

     0   :  { %10 = vsyncpa [#allocation3], 0  ;;  %s322_s0 = inlined_call_operand.hbm [shape: f32[2,128], index: 0, kind: input, shape index: {}]   ;;  %s323_s1 = inlined_call_operand.hbm [shape: f32[12,128], index: 1, kind: input, shape index: {}]   ;;  %s324_s2 = inlined_call_operand.hbm [shape: f32[12,128], index: 2, kind: input, shape index: {}]   ;;  %s325_s3 = inlined_call_operand.hbm [shape: f32[8,128], index: 3, kind: output, shape index: {0}]   ;;  %s326_s4 = inlined_call_operand.hbm [shape: f32[8,128], index: 4, kind: output, shape index: {1}]  }
   0x1   :  { %11 = vsyncpa [#allocation6], 0 }
   0x2   :  { %12 = vsyncpa [#allocation4], 0 }
   0x3   :  { %13 = vsyncpa [#allocation10], 0  ;;  %s31_s17 = sshll.u32 %s323_s1, 4  ;;  %s32_s17 = int_to_ptr.hbm [resolvable:$true] %s31_s17 }
   0x4   :  { %17 = vsyncadd [#allocation3], 96  ;;  %s273_s18 = smov [#allocation5]   ;;  %s18_s22 = sshll.u32 %s322_s0, 4  ;;  %s19_s22 = int_to_ptr.hbm [resolvable:$true] %s18_s22 }
   0x5   :  { %s33_s19 = sshll.u32 %s273_s18, 4  ;;  %s274_s23 = smov 128   ;;  %s34_s19 = int_to_ptr.vmem [resolvable:$true] %s33_s19 }
   0x6   :  { %s275_s24 = smov 8   ;;  %s276_s25 = smov [#allocation2]  }
   0x7   :  { %39 = dma.hbm_to_vmem [thread:$0]  %s32_s17, 256, %s34_s19, [#allocation6], %s274_s23, %s274_s23, %s275_s24  }
   0x8   :  { %s20_s26 = sshll.u32 %s276_s25, 4  ;;  %s277_s27 = smov 32   ;;  %s21_s26 = int_to_ptr.vmem [resolvable:$true] %s20_s26 }
   0x9   :  { %s278_s28 = smov 2   ;;  %s44_s30 = sshll.u32 %s324_s2, 4  ;;  %s45_s30 = int_to_ptr.hbm [resolvable:$true] %s44_s30 }
   0xa   :  { %26 = dma.hbm_to_vmem [thread:$0]  %s19_s22, 32, %s21_s26, [#allocation3], %s277_s27, %s277_s27, %s278_s28  }
   0xb   :  { %s279_s5 = smov [#allocation7]  }
   0xc   :  { %s46_s6 = sshll.u32 %s279_s5, 4  ;;  %s47_s6 = int_to_ptr.vmem [resolvable:$true] %s46_s6 }
   0xd   :  { %52 = dma.hbm_to_vmem [thread:$0]  %s45_s30, 256, %s47_s6, [#allocation6], %s274_s23, %s274_s23, %s275_s24  }
   0xe   :  { %265 = dma.done.wait [#allocation3], 128  }
   0xf   :  { %266 = vsyncadd [#allocation3], 4294967168 }
  0x10   :  { %267 = dma.done.wait [#allocation6], 512  }
  0x11   :  { %268 = vsyncadd [#allocation6], 4294966784  ;;  %v80_v0 = vlaneseq  ;;  %v72_v3 = vld [vmem:[#allocation5] sm:$0xff]  ;;  %v73_v4 = vld [vmem:[#allocation5 + $0x8] sm:$0xff]  ;;  %s280_s0 = smov [#allocation9]   ;;  %s117_s9 = sshll.u32 %s326_s4, 4  ;;  %s118_s9 = int_to_ptr.hbm [resolvable:$true] %s117_s9 }
  0x12   :  { %v74_v5 = vld [vmem:[#allocation7] sm:$0xff]  ;;  %v75_v6 = vld [vmem:[#allocation7 + $0x8] sm:$0xff]  ;;  %s115_s2 = sshll.u32 %s280_s0, 4  ;;  %s281_s10 = smov [#allocation8]   ;;  %s116_s2 = int_to_ptr.vmem [resolvable:$true] %s115_s2 }
  0x13   :  { %v81_v1 = vshrl.u32 %v80_v0, 7  ;;  %v76_v7 = vsub.f32 %v72_v3, %v74_v5  ;;  %v91_v8 = vld [vmem:[#allocation2] sm:$0xff]  ;;  %v77_v9 = vsub.f32 %v73_v4, %v75_v6  ;;  %s104_s11 = sshll.u32 %s281_s10, 4  ;;  %s106_s14 = sshll.u32 %s325_s3, 4  ;;  %s105_s11 = int_to_ptr.vmem [resolvable:$true] %s104_s11  ;;  %s107_s14 = int_to_ptr.hbm [resolvable:$true] %s106_s14 }
  0x14   :  { %143 = vlog2.f32 %v91_v8 }
  0x15   :  { %v82_v2 = vadd.s32 8, %v81_v1  ;;  %v78_v10 = vmul.f32 %v76_v7, %v76_v7  ;;  %v79_v11 = vmul.f32 %v77_v9, %v77_v9  ;;  %vm94_vm1 = vcmp.lt.s32.totalorder %v81_v1, 2 }
  0x17   :  { %vm84_vm0 = vcmp.lt.s32.totalorder %v82_v2, 12 }
  0x18   :  { %v86_v12 = vsel %vm84_vm0, %v79_v11, 0.0 }
  0x19   :  { %v87_v13 = vadd.f32 %v86_v12, %v78_v10 }
  0x1a   :  { %v144_v14 = vpop.eup %143 }
  0x1b   :  { %v93_v15 = vmul.f32 0.6931472, %v144_v14  ;;  %89 = vst [vmem:[#allocation9] sm:$0xff] %v87_v13 }
  0x1c   :  { %120 = dma.vmem_to_hbm [thread:$0]  %s116_s2, 128, %s118_s9, [#allocation10]  }
  0x1d   :  { %v95_v16 = vsel %vm94_vm1, %v93_v15, 0.0 }
  0x1e   :  { %98 = vst [vmem:[#allocation8] sm:$0xff] %v95_v16 }
  0x1f   :  { %109 = dma.vmem_to_hbm [thread:$0]  %s105_s11, 128, %s107_s14, [#allocation4]  }
  0x20   :  { %269 = dma.done.wait [#allocation4], 128  }
  0x21   :  { %270 = vsyncadd [#allocation4], 4294967168 }
  0x22   :  { %271 = dma.done.wait [#allocation10], 128  }
  0x23   :  { %272 = vsyncadd [#allocation10], 4294967168 }
  0x24   :  { %129 = vsyncpa [#allocation3], 1 }
  0x25   :  { %130 = vsyncpa [#allocation6], 1 }
  0x26   :  { %131 = vsyncpa [#allocation4], 1 }
  0x27   :  { %132 = vsyncpa [#allocation10], 1 }

</bundles_post_ra>
